<compile_context>
chip_gen: v7x
topology: tpu7x:2x2x1
jax: 0.10.0
libtpu: 0.0.40
codegen_flags: <defaults>
</compile_context>

<pallas_src>
import functools

import jax
import jax.numpy as jnp
from jax.experimental import pallas as pl
from jax.experimental.pallas import tpu as pltpu


def _fused_mlp_kernel(*refs, relu_flags):
    """Fused forward: x -> (Linear [+ReLU]) * L, all intermediates stay in vregs.

    refs = (x_ref, w0_ref, b0_ref, w1_ref, b1_ref, ..., o_ref)
    """
    x_ref = refs[0]
    o_ref = refs[-1]
    wb_refs = refs[1:-1]

    h = x_ref[...].astype(jnp.float32)
    for li, apply_relu in enumerate(relu_flags):
        w = wb_refs[2 * li][...]          # [D_in, D_out], VMEM-resident
        b = wb_refs[2 * li + 1][...]      # [1, D_out] -> broadcasts over rows
        h = jnp.dot(h, w, preferred_element_type=jnp.float32) + b
        if apply_relu:
            h = jnp.maximum(h, 0.0)
    o_ref[...] = h.astype(o_ref.dtype)


def autoencoder_forward(x, params, *, batch_tile=None):
    """Run the whole autoencoder forward as one Pallas kernel.

    x: [B, D_in] f32
    params: list of (W [D_in, D_out], b [D_out], apply_relu) in forward order.
    """
    B, Din = x.shape
    Dout_final = params[-1][0].shape[1]
    relu_flags = tuple(bool(p[2]) for p in params)

    # Batch tiling: big blocks amortize the ~0.35 us/step grid overhead; the
    # feature dims are tiny so the reduction stays fully inside the block.
    if batch_tile is None:
        batch_tile = 128 if (B % 128 == 0 and B > 128) else B
    assert B % batch_tile == 0, (B, batch_tile)
    grid = (B // batch_tile,)

    in_specs = [pl.BlockSpec((batch_tile, Din), lambda i: (i, 0))]
    inputs = [x]
    for w, b, _ in params:
        din, dout = w.shape
        # Constant index_maps -> weights/biases stay resident in VMEM across the
        # whole batch grid (no re-DMA per block).
        in_specs.append(pl.BlockSpec((din, dout), lambda i: (0, 0)))
        in_specs.append(pl.BlockSpec((1, dout), lambda i: (0, 0)))
        inputs.append(w)
        inputs.append(b.reshape(1, dout))

    out_spec = pl.BlockSpec((batch_tile, Dout_final), lambda i: (i, 0))

    # TODO(synk): if layer widths are ever scaled to the thousands, re-derive
    # tile sizes (256-multiples on v6e/v7x, 128 on v5e; bf16 storage) and set
    # vmem_limit_bytes explicitly for v7x's 64 MiB VMEM.
    return pl.pallas_call(
        functools.partial(_fused_mlp_kernel, relu_flags=relu_flags),
        out_shape=jax.ShapeDtypeStruct((B, Dout_final), x.dtype),
        grid=grid,
        in_specs=in_specs,
        out_specs=out_spec,
        compiler_params=pltpu.CompilerParams(
            dimension_semantics=("parallel",),  # batch blocks split across TCs (v7x)
        ),
    )(*inputs)


def init_autoencoder_params(key, encoder_layers, decoder_layers):
    """Deterministic init mimicking torch.nn.Linear default: U(-1/sqrt(in), 1/sqrt(in)).

    Returns a list of (W [D_in, D_out], b [D_out], apply_relu) per layer,
    in forward order (encoder first, then decoder).
    """
    params = []

    def add_stack(key, layers, relu_on_last):
        for i in range(len(layers) - 1):
            din, dout = layers[i], layers[i + 1]
            key, kw, kb = jax.random.split(key, 3)
            bound = 1.0 / (din ** 0.5)
            w = jax.random.uniform(kw, (din, dout), jnp.float32, -bound, bound)
            b = jax.random.uniform(kb, (dout,), jnp.float32, -bound, bound)
            relu = True if (i != len(layers) - 2) else relu_on_last
            params.append((w, b, relu))
        return key

    # Encoder: ReLU after every Linear (including the last one).
    key = add_stack(key, encoder_layers, relu_on_last=True)
    # Decoder: ReLU after every Linear except the last one.
    key = add_stack(key, decoder_layers, relu_on_last=False)
    return params


def autoencoder_forward_ref(x, params):
    # Pure-JAX reference for a correctness sanity check.
    out = x
    for w, b, relu in params:
        out = out @ w + b
        if relu:
            out = jnp.maximum(out, 0.0)
    return out


if __name__ == "__main__":
    # Forward-consistent shapes: 32 -> 16 -> 8 (bottleneck) -> 16 -> 32.
    encoder_layers = [32, 16, 8]
    decoder_layers = [8, 16, 32]
    batch = 256  # tiled into 128-row "parallel" blocks -> grid=(2,)

    key = jax.random.PRNGKey(0)
    key, kx, kp = jax.random.split(key, 3)
    x = jax.random.normal(kx, (batch, encoder_layers[0]), jnp.float32)

    params = init_autoencoder_params(kp, encoder_layers, decoder_layers)

    out = autoencoder_forward(x, params)
    out = jax.block_until_ready(out)

    ref = autoencoder_forward_ref(x, params)
    assert out.shape == (batch, decoder_layers[-1]), out.shape
    assert jnp.allclose(out, ref, atol=1e-5, rtol=1e-5), "mismatch vs JAX reference"

    print("KERNEL_OK")
</pallas_src>

<mosaic_0001>
module attributes {stable_mosaic.version = 11 : i64} {
  func.func @_fused_mlp_kernel(%arg0: i32, %arg1: memref<128x32xf32, #tpu.memory_space<vmem>>, %arg2: memref<32x16xf32, #tpu.memory_space<vmem>>, %arg3: memref<1x16xf32, #tpu.memory_space<vmem>>, %arg4: memref<16x8xf32, #tpu.memory_space<vmem>>, %arg5: memref<1x8xf32, #tpu.memory_space<vmem>>, %arg6: memref<8x16xf32, #tpu.memory_space<vmem>>, %arg7: memref<1x16xf32, #tpu.memory_space<vmem>>, %arg8: memref<16x32xf32, #tpu.memory_space<vmem>>, %arg9: memref<1x32xf32, #tpu.memory_space<vmem>>, %arg10: memref<128x32xf32, #tpu.memory_space<vmem>>) attributes {dimension_semantics = [#tpu.dimension_semantics<parallel>], iteration_bounds = array<i64: 2>, scalar_prefetch = 0 : i64, scratch_operands = 0 : i64, tpu.core_type = #tpu.core_type<tc>, window_params = [{transform_indices = @transform_0, window_bounds = array<i64: 128, 32>}, {pipeline_mode = #tpu.pipeline_mode<synchronous>, transform_indices = @transform_1, window_bounds = array<i64: 32, 16>}, {pipeline_mode = #tpu.pipeline_mode<synchronous>, transform_indices = @transform_2, window_bounds = array<i64: 1, 16>}, {pipeline_mode = #tpu.pipeline_mode<synchronous>, transform_indices = @transform_3, window_bounds = array<i64: 16, 8>}, {pipeline_mode = #tpu.pipeline_mode<synchronous>, transform_indices = @transform_4, window_bounds = array<i64: 1, 8>}, {pipeline_mode = #tpu.pipeline_mode<synchronous>, transform_indices = @transform_5, window_bounds = array<i64: 8, 16>}, {pipeline_mode = #tpu.pipeline_mode<synchronous>, transform_indices = @transform_6, window_bounds = array<i64: 1, 16>}, {pipeline_mode = #tpu.pipeline_mode<synchronous>, transform_indices = @transform_7, window_bounds = array<i64: 16, 32>}, {pipeline_mode = #tpu.pipeline_mode<synchronous>, transform_indices = @transform_8, window_bounds = array<i64: 1, 32>}, {transform_indices = @transform_9, window_bounds = array<i64: 128, 32>}]} {
    %c0 = arith.constant 0 : index
    %c0_0 = arith.constant 0 : index
    %0 = vector.load %arg1[%c0, %c0_0] : memref<128x32xf32, #tpu.memory_space<vmem>>, vector<128x32xf32>
    %c0_1 = arith.constant 0 : index
    %c0_2 = arith.constant 0 : index
    %1 = vector.load %arg2[%c0_1, %c0_2] : memref<32x16xf32, #tpu.memory_space<vmem>>, vector<32x16xf32>
    %c0_3 = arith.constant 0 : index
    %c0_4 = arith.constant 0 : index
    %2 = vector.load %arg3[%c0_3, %c0_4] : memref<1x16xf32, #tpu.memory_space<vmem>>, vector<1x16xf32>
    %cst = arith.constant dense<0.000000e+00> : vector<128x16xf32>
    %3 = tpu.matmul %0, %1, %cst {dimension_numbers = #tpu.dot_dimension_numbers<[1], [0], [0], [1], [0, 0, 1, 1], [], []>} : vector<128x32xf32>, vector<32x16xf32>, vector<128x16xf32> -> vector<128x16xf32>
    %4 = vector.broadcast %2 : vector<1x16xf32> to vector<128x16xf32>
    %5 = arith.addf %3, %4 : vector<128x16xf32>
    %cst_5 = arith.constant 0.000000e+00 : f32
    %6 = vector.broadcast %cst_5 : f32 to vector<128x16xf32>
    %7 = arith.maximumf %5, %6 : vector<128x16xf32>
    %c0_6 = arith.constant 0 : index
    %c0_7 = arith.constant 0 : index
    %8 = vector.load %arg4[%c0_6, %c0_7] : memref<16x8xf32, #tpu.memory_space<vmem>>, vector<16x8xf32>
    %c0_8 = arith.constant 0 : index
    %c0_9 = arith.constant 0 : index
    %9 = vector.load %arg5[%c0_8, %c0_9] : memref<1x8xf32, #tpu.memory_space<vmem>>, vector<1x8xf32>
    %cst_10 = arith.constant dense<0.000000e+00> : vector<128x8xf32>
    %10 = tpu.matmul %7, %8, %cst_10 {dimension_numbers = #tpu.dot_dimension_numbers<[1], [0], [0], [1], [0, 0, 1, 1], [], []>} : vector<128x16xf32>, vector<16x8xf32>, vector<128x8xf32> -> vector<128x8xf32>
    %11 = vector.broadcast %9 : vector<1x8xf32> to vector<128x8xf32>
    %12 = arith.addf %10, %11 : vector<128x8xf32>
    %cst_11 = arith.constant 0.000000e+00 : f32
    %13 = vector.broadcast %cst_11 : f32 to vector<128x8xf32>
    %14 = arith.maximumf %12, %13 : vector<128x8xf32>
    %c0_12 = arith.constant 0 : index
    %c0_13 = arith.constant 0 : index
    %15 = vector.load %arg6[%c0_12, %c0_13] : memref<8x16xf32, #tpu.memory_space<vmem>>, vector<8x16xf32>
    %c0_14 = arith.constant 0 : index
    %c0_15 = arith.constant 0 : index
    %16 = vector.load %arg7[%c0_14, %c0_15] : memref<1x16xf32, #tpu.memory_space<vmem>>, vector<1x16xf32>
    %cst_16 = arith.constant dense<0.000000e+00> : vector<128x16xf32>
    %17 = tpu.matmul %14, %15, %cst_16 {dimension_numbers = #tpu.dot_dimension_numbers<[1], [0], [0], [1], [0, 0, 1, 1], [], []>} : vector<128x8xf32>, vector<8x16xf32>, vector<128x16xf32> -> vector<128x16xf32>
    %18 = vector.broadcast %16 : vector<1x16xf32> to vector<128x16xf32>
    %19 = arith.addf %17, %18 : vector<128x16xf32>
    %cst_17 = arith.constant 0.000000e+00 : f32
    %20 = vector.broadcast %cst_17 : f32 to vector<128x16xf32>
    %21 = arith.maximumf %19, %20 : vector<128x16xf32>
    %c0_18 = arith.constant 0 : index
    %c0_19 = arith.constant 0 : index
    %22 = vector.load %arg8[%c0_18, %c0_19] : memref<16x32xf32, #tpu.memory_space<vmem>>, vector<16x32xf32>
    %c0_20 = arith.constant 0 : index
    %c0_21 = arith.constant 0 : index
    %23 = vector.load %arg9[%c0_20, %c0_21] : memref<1x32xf32, #tpu.memory_space<vmem>>, vector<1x32xf32>
    %cst_22 = arith.constant dense<0.000000e+00> : vector<128x32xf32>
    %24 = tpu.matmul %21, %22, %cst_22 {dimension_numbers = #tpu.dot_dimension_numbers<[1], [0], [0], [1], [0, 0, 1, 1], [], []>} : vector<128x16xf32>, vector<16x32xf32>, vector<128x32xf32> -> vector<128x32xf32>
    %25 = vector.broadcast %23 : vector<1x32xf32> to vector<128x32xf32>
    %26 = arith.addf %24, %25 : vector<128x32xf32>
    %c0_23 = arith.constant 0 : index
    %c0_24 = arith.constant 0 : index
    %27 = vector.load %arg10[%c0_23, %c0_24] : memref<128x32xf32, #tpu.memory_space<vmem>>, vector<128x32xf32>
    tpu.vector_store %arg10[%c0_23, %c0_24], %26 {strides = array<i32>} : memref<128x32xf32, #tpu.memory_space<vmem>>, vector<128x32xf32>,
    return
  }
  func.func @transform_0(%arg0: i32) -> (i32, i32) {
    %c0_i32 = arith.constant 0 : i32
    %c0_i32_0 = arith.constant 0 : i32
    return %arg0, %c0_i32 : i32, i32
  }
  func.func @transform_1(%arg0: i32) -> (i32, i32) {
    %c0_i32 = arith.constant 0 : i32
    %c0_i32_0 = arith.constant 0 : i32
    %c0_i32_1 = arith.constant 0 : i32
    return %c0_i32, %c0_i32_0 : i32, i32
  }
  func.func @transform_2(%arg0: i32) -> (i32, i32) {
    %c0_i32 = arith.constant 0 : i32
    %c0_i32_0 = arith.constant 0 : i32
    %c0_i32_1 = arith.constant 0 : i32
    return %c0_i32, %c0_i32_0 : i32, i32
  }
  func.func @transform_3(%arg0: i32) -> (i32, i32) {
    %c0_i32 = arith.constant 0 : i32
    %c0_i32_0 = arith.constant 0 : i32
    %c0_i32_1 = arith.constant 0 : i32
    return %c0_i32, %c0_i32_0 : i32, i32
  }
  func.func @transform_4(%arg0: i32) -> (i32, i32) {
    %c0_i32 = arith.constant 0 : i32
    %c0_i32_0 = arith.constant 0 : i32
    %c0_i32_1 = arith.constant 0 : i32
    return %c0_i32, %c0_i32_0 : i32, i32
  }
  func.func @transform_5(%arg0: i32) -> (i32, i32) {
    %c0_i32 = arith.constant 0 : i32
    %c0_i32_0 = arith.constant 0 : i32
    %c0_i32_1 = arith.constant 0 : i32
    return %c0_i32, %c0_i32_0 : i32, i32
  }
  func.func @transform_6(%arg0: i32) -> (i32, i32) {
    %c0_i32 = arith.constant 0 : i32
    %c0_i32_0 = arith.constant 0 : i32
    %c0_i32_1 = arith.constant 0 : i32
    return %c0_i32, %c0_i32_0 : i32, i32
  }
  func.func @transform_7(%arg0: i32) -> (i32, i32) {
    %c0_i32 = arith.constant 0 : i32
    %c0_i32_0 = arith.constant 0 : i32
    %c0_i32_1 = arith.constant 0 : i32
    return %c0_i32, %c0_i32_0 : i32, i32
  }
  func.func @transform_8(%arg0: i32) -> (i32, i32) {
    %c0_i32 = arith.constant 0 : i32
    %c0_i32_0 = arith.constant 0 : i32
    %c0_i32_1 = arith.constant 0 : i32
    return %c0_i32, %c0_i32_0 : i32, i32
  }
  func.func @transform_9(%arg0: i32) -> (i32, i32) {
    %c0_i32 = arith.constant 0 : i32
    %c0_i32_0 = arith.constant 0 : i32
    return %arg0, %c0_i32 : i32, i32
  }
}

</mosaic_0001>

<bundles_post_ra>
// kernel: tpu_custom_call.1
= control target key start
LH: loop header
LB: loop body
LE: loop exit
PB: predicated region body
PF: predicated region fallthrough
CT: control target
= control target key end

     0   :  { %s1632_s30 = smov 0   ;;  %s1811_s0 = inlined_call_operand.vmem [shape: f32[256,32], index: 0, kind: input, shape index: {}]   ;;  %s1812_s1 = inlined_call_operand.vmem [shape: f32[32,16], index: 1, kind: input, shape index: {}]   ;;  %s1813_s2 = inlined_call_operand.vmem [shape: f32[1,16], index: 2, kind: input, shape index: {}]   ;;  %s1814_s3 = inlined_call_operand.vmem [shape: f32[16,8], index: 3, kind: input, shape index: {}]   ;;  %s1815_s4 = inlined_call_operand.vmem [shape: f32[1,8], index: 4, kind: input, shape index: {}]   ;;  %s1816_s5 = inlined_call_operand.vmem [shape: f32[8,16], index: 5, kind: input, shape index: {}]   ;;  %s1817_s6 = inlined_call_operand.vmem [shape: f32[1,16], index: 6, kind: input, shape index: {}]   ;;  %s1818_s7 = inlined_call_operand.vmem [shape: f32[16,32], index: 7, kind: input, shape index: {}]   ;;  %s1819_s8 = inlined_call_operand.vmem [shape: f32[1,32], index: 8, kind: input, shape index: {}]   ;;  %s1820_s9 = inlined_call_operand.vmem [shape: f32[256,32], index: 9, kind: output, shape index: {}]  }
   0x1 LB: > { %s1284_s10 = sadd.s32 4294967295, %s1580_s30   ;;  %p1288_p0 = scmp.ge.s32.totalorder %s1580_s30, 1  ;;  %s1580_s30 = sphi %s1632_s30, %s19_s30  }
   0x2   : > { %p288_p1 = scmp.lt.s32.totalorder %s1580_s30, 3 }
   0x4   : > { %p289_p2 = pnand %p1288_p0, %p288_p1 }
   0x5   : > { %v352_v0 = vld [vmem:[%s1812_s1] sm:$0xff] (!%p289_p2)  ;;  %v353_v1 = vld [vmem:[%s1812_s1 + $0x8] sm:$0xff] (!%p289_p2)  ;;  %v354_v2 = vld [vmem:[%s1812_s1 + $0x10] sm:$0xff] (!%p289_p2)  ;;  %s1289_s17 = sshll.u32 (!%p289_p2), %s1284_s10, 4  ;;  %vm363_vm0 = vcmask (!%p289_p2), 261120   ;;  %vm582_vm1 = vcmask (!%p289_p2), 130048  }
   0x6   : > { %292 = sbr.rel (%p289_p2) target bundleno = 916 (0x394), region = 56  ;;  %v1550_v3 = vpack.c.bf16 (!%p289_p2), %v353_v1, %v352_v0  ;;  %v355_v4 = vld [vmem:[%s1812_s1 + $0x18] sm:$0xff] (!%p289_p2)  ;;  %p325_p3 = scmp.lt.s32.totalorder (!%p289_p2), %s1289_s17, 31  ;;  %v573_v22 = vld [vmem:[%s1814_s3] sm:$0xff] (!%p289_p2)  ;;  %v574_v23 = vld [vmem:[%s1814_s3 + $0x8] sm:$0xff] (!%p289_p2)  ;;  %vm800_vm2 = vcmask (!%p289_p2), 64512  }
   0x7   : > { %v1554_v5 = vpack.c.bf16 (!%p289_p2), %v355_v4, %v354_v2  ;;  %v1558_v24 = vpack.c.bf16 (!%p289_p2), %v574_v23, %v573_v22  ;;  %v792_v25 = vld [vmem:[%s1816_s5] sm:$0xff] (!%p289_p2) }
   0x8   : > { %1551 = vmatprep.subr.bf16.mxu0 (!%p289_p2), %v1550_v3  ;;  %v1293_v26 = vld [vmem:[%s1813_s2] ss:$0 sm:$0xff] (!%p289_p2) }
   0x9   : > { %1553 = vmatpush3.bf16.msra.mxu0 (!%p289_p2), %v1550_v3  ;;  %1559 = vmatprep.subr.bf16.mxu1 (!%p289_p2), %v1558_v24 }
   0xa   : > { %1555 = vmatprep.subr.bf16.mxu0 (!%p289_p2), %v1554_v5  ;;  %1561 = vmatpush3.bf16.msra.mxu1 (!%p289_p2), %v1558_v24 }
   0xb   : > { %1496 = vmatprep.subr.mxu1 (!%p289_p2), %v792_v25 }
   0xd   : > { %s1822_s17 = smov (!%p325_p3, %s1289_s17), 31  ;;  %1557 = vmatpush3.bf16.msra.mxu0 %v1554_v5 }
   0xe   : > { %s1290_s20 = sshll.u32 %s1822_s17, 3 }
   0xf   : > { %s1660_s23 = scalar_lea.vmem %s1811_s0, %s1290_s20  ;;  %s1774_s26 = scalar_lea.vmem %s1820_s9, %s1290_s20 }
  0x10   : > { %v336_v6 = vld [vmem:[%s1660_s23] sm:$0xff]  ;;  %v337_v7 = vld [vmem:[%s1660_s23 + $0x8] sm:$0xff]  ;;  %v338_v8 = vld [vmem:[%s1660_s23 + $0x10] sm:$0xff] }
  0x11   : > { %1444 = vmatprep.mubr.msk.f32.mxu0 %vm363_vm0, %v336_v6  ;;  %v339_v9 = vld [vmem:[%s1660_s23 + $0x18] sm:$0xff]  ;;  %v340_v10 = vld [vmem:[%s1660_s23 + $0x20] sm:$0xff]  ;;  %v341_v11 = vld [vmem:[%s1660_s23 + $0x28] sm:$0xff] }
  0x12   : > { %1445 = vmatmul.mubr.msk.f32.vlgmr.msra.gmra.mrb[0].mxu0 %vm363_vm0, %v337_v7  ;;  %v342_v12 = vld [vmem:[%s1660_s23 + $0x30] sm:$0xff]  ;;  %v343_v13 = vld [vmem:[%s1660_s23 + $0x38] sm:$0xff]  ;;  %v344_v14 = vld [vmem:[%s1660_s23 + $0x40] sm:$0xff] }
  0x13   : > { %1447 = vmatprep.mubr.msk.f32.mxu0 %vm363_vm0, %v338_v8  ;;  %v345_v15 = vld [vmem:[%s1660_s23 + $0x48] sm:$0xff]  ;;  %v346_v16 = vld [vmem:[%s1660_s23 + $0x50] sm:$0xff]  ;;  %v347_v17 = vld [vmem:[%s1660_s23 + $0x58] sm:$0xff] }
  0x14   : > { %v348_v18 = vld [vmem:[%s1660_s23 + $0x60] sm:$0xff]  ;;  %v349_v19 = vld [vmem:[%s1660_s23 + $0x68] sm:$0xff]  ;;  %v350_v20 = vld [vmem:[%s1660_s23 + $0x70] sm:$0xff] }
  0x15   : > { %v351_v21 = vld [vmem:[%s1660_s23 + $0x78] sm:$0xff] }
  0x16   : > { %1448 = vmatmul.mubr.msk.f32.gmra.mrb[2].mxu0 %vm363_vm0, %v339_v9 }
  0x17   : > { %1450 = vmatprep.mubr.msk.f32.mxu0 %vm363_vm0, %v340_v10 }
  0x1a   : > { %1451 = vmatmul.mubr.msk.f32.gmra.mrb[4].mxu0 %vm363_vm0, %v341_v11  ;;  %v1010_v11 = vld [vmem:[%s1818_s7] sm:$0xff] }
  0x1b   : > { %1453 = vmatprep.mubr.msk.f32.mxu0 %vm363_vm0, %v342_v12  ;;  %v1011_v12 = vld [vmem:[%s1818_s7 + $0x8] sm:$0xff] }
  0x1e   : > { %1454 = vmatmul.mubr.msk.f32.gmra.mrb[6].mxu0 %vm363_vm0, %v343_v13  ;;  %v1562_v13 = vpack.c.bf16 %v1011_v12, %v1010_v11 }
  0x1f   : > { %1456 = vmatprep.mubr.msk.f32.mxu0 %vm363_vm0, %v344_v14  ;;  %v1310_v14 = vld [vmem:[%s1815_s4] ss:$0 sm:$0xff] }
  0x20   : > { %1563 = vmatprep.subr.bf16.mxu0 %v1562_v13 }
  0x21   : > { %1565 = vmatpush3.bf16.msra.mxu0 %v1562_v13 }
  0x22   : > { %1457 = vmatmul.mubr.msk.f32.gmra.mrb[8].mxu0 %vm363_vm0, %v345_v15 }
  0x23   : > { %1459 = vmatprep.mubr.msk.f32.mxu0 %vm363_vm0, %v346_v16 }
  0x26   : > { %1460 = vmatmul.mubr.msk.f32.gmra.mrb[10].mxu0 %vm363_vm0, %v347_v17 }
  0x27   : > { %1462 = vmatprep.mubr.msk.f32.mxu0 %vm363_vm0, %v348_v18 }
  0x2a   : > { %1463 = vmatmul.mubr.msk.f32.gmra.mrb[12].mxu0 %vm363_vm0, %v349_v19 }
  0x2b   : > { %1465 = vmatprep.mubr.msk.f32.mxu0 %vm363_vm0, %v350_v20 }
  0x2e   : > { %1466 = vmatmul.mubr.msk.f32.gmra.mrb[14].mxu0 %vm363_vm0, %v351_v21 }
  0xe5   : > { %v1446_v27 = vpop.f32.mrb[0].mxu0 }
  0xe6   : > { %v484_v28 = vadd.f32 %v1446_v27, %v1293_v26  ;;  %v478_v29 = vpop.f32.mrb[1].mxu0 }
  0xe7   : > { %v479_v30 = vadd.f32 %v1293_v26, %v478_v29 }
  0xe8   : > { %v558_v33 = vmax.f32 %v484_v28, 0.0 }
  0xe9   : > { %v557_v31 = vmax.f32 %v479_v30, 0.0  ;;  %v1449_v32 = vpop.f32.mrb[2].mxu0 }
  0xea   : > { %v494_v34 = vadd.f32 %v1449_v32, %v1293_v26  ;;  %v488_v35 = vpop.f32.mrb[3].mxu0 }
  0xeb   : > { %v489_v36 = vadd.f32 %v1293_v26, %v488_v35  ;;  %1472 = vmatprep.mubr.msk.f32.mxu1 %vm582_vm1, %v557_v31 }
  0xec   : > { %1473 = vmatmul.mubr.msk.f32.vlgmr.msra.gmra.mrb[0].mxu1 %vm582_vm1, %v558_v33  ;;  %v560_v39 = vmax.f32 %v494_v34, 0.0 }
  0xed   : > { %v559_v37 = vmax.f32 %v489_v36, 0.0  ;;  %v1452_v38 = vpop.f32.mrb[4].mxu0  ;;  %1497 = vmatpush3.msra.mxu1 %v792_v25 }
  0xee   : > { %v504_v40 = vadd.f32 %v1452_v38, %v1293_v26  ;;  %v498_v41 = vpop.f32.mrb[5].mxu0 }
  0xef   : > { %v499_v42 = vadd.f32 %v1293_v26, %v498_v41  ;;  %1475 = vmatprep.mubr.msk.f32.mxu1 %vm582_vm1, %v559_v37 }
  0xf0   : > { %1476 = vmatmul.mubr.msk.f32.gmra.mrb[2].mxu1 %vm582_vm1, %v560_v39  ;;  %v562_v45 = vmax.f32 %v504_v40, 0.0 }
  0xf1   : > { %v561_v43 = vmax.f32 %v499_v42, 0.0  ;;  %v1455_v44 = vpop.f32.mrb[6].mxu0 }
  0xf2   : > { %v514_v46 = vadd.f32 %v1455_v44, %v1293_v26  ;;  %v508_v47 = vpop.f32.mrb[7].mxu0 }
  0xf3   : > { %v509_v48 = vadd.f32 %v1293_v26, %v508_v47  ;;  %1478 = vmatprep.mubr.msk.f32.mxu1 %vm582_vm1, %v561_v43 }
  0xf4   : > { %1479 = vmatmul.mubr.msk.f32.gmra.mrb[4].mxu1 %vm582_vm1, %v562_v45  ;;  %v564_v51 = vmax.f32 %v514_v46, 0.0 }
  0xf5   : > { %v563_v49 = vmax.f32 %v509_v48, 0.0  ;;  %v1458_v50 = vpop.f32.mrb[8].mxu0 }
  0xf6   : > { %v524_v52 = vadd.f32 %v1458_v50, %v1293_v26  ;;  %v518_v53 = vpop.f32.mrb[9].mxu0 }
  0xf7   : > { %v519_v54 = vadd.f32 %v1293_v26, %v518_v53  ;;  %1481 = vmatprep.mubr.msk.f32.mxu1 %vm582_vm1, %v563_v49 }
  0xf8   : > { %1482 = vmatmul.mubr.msk.f32.gmra.mrb[6].mxu1 %vm582_vm1, %v564_v51  ;;  %v566_v57 = vmax.f32 %v524_v52, 0.0 }
  0xf9   : > { %v565_v55 = vmax.f32 %v519_v54, 0.0  ;;  %v1461_v56 = vpop.f32.mrb[10].mxu0 }
  0xfa   : > { %v534_v58 = vadd.f32 %v1461_v56, %v1293_v26  ;;  %v528_v59 = vpop.f32.mrb[11].mxu0 }
  0xfb   : > { %v529_v60 = vadd.f32 %v1293_v26, %v528_v59  ;;  %1484 = vmatprep.mubr.msk.f32.mxu1 %vm582_vm1, %v565_v55 }
  0xfc   : > { %1485 = vmatmul.mubr.msk.f32.gmra.mrb[8].mxu1 %vm582_vm1, %v566_v57  ;;  %v568_v63 = vmax.f32 %v534_v58, 0.0 }
  0xfd   : > { %v567_v61 = vmax.f32 %v529_v60, 0.0  ;;  %v1464_v62 = vpop.f32.mrb[12].mxu0 }
  0xfe   : > { %v544_v0 = vadd.f32 %v1464_v62, %v1293_v26  ;;  %v538_v1 = vpop.f32.mrb[13].mxu0 }
  0xff   : > { %v539_v2 = vadd.f32 %v1293_v26, %v538_v1  ;;  %1487 = vmatprep.mubr.msk.f32.mxu1 %vm582_vm1, %v567_v61 }
 0x100   : > { %1488 = vmatmul.mubr.msk.f32.gmra.mrb[10].mxu1 %vm582_vm1, %v568_v63  ;;  %v570_v5 = vmax.f32 %v544_v0, 0.0  ;;  %v1327_v63 = vld [vmem:[%s1817_s6] ss:$0 sm:$0xff] }
 0x101   : > { %v569_v3 = vmax.f32 %v539_v2, 0.0  ;;  %v1467_v4 = vpop.f32.mrb[14].mxu0 }
 0x102   : > { %v554_v6 = vadd.f32 %v1467_v4, %v1293_v26  ;;  %v548_v7 = vpop.f32.mrb[15].mxu0 }
 0x103   : > { %v549_v8 = vadd.f32 %v1293_v26, %v548_v7  ;;  %1490 = vmatprep.mubr.msk.f32.mxu1 %vm582_vm1, %v569_v3 }
 0x104   : > { %1491 = vmatmul.mubr.msk.f32.gmra.mrb[12].mxu1 %vm582_vm1, %v570_v5  ;;  %v572_v10 = vmax.f32 %v554_v6, 0.0 }
 0x105   : > { %v571_v9 = vmax.f32 %v549_v8, 0.0 }
 0x107   : > { %1493 = vmatprep.mubr.msk.f32.mxu1 %vm582_vm1, %v571_v9 }
 0x108   : > { %1494 = vmatmul.mubr.msk.f32.gmra.mrb[14].mxu1 %vm582_vm1, %v572_v10 }
 0x1bf   : > { %v1474_v15 = vpop.f32.mrb[0].mxu1 }
 0x1c0   : > { %v703_v16 = vadd.f32 %v1474_v15, %v1310_v14  ;;  %v697_v17 = vpop.f32.mrb[1].mxu1 }
 0x1c1   : > { %v698_v18 = vadd.f32 %v1310_v14, %v697_v17 }
 0x1c2   : > { %v777_v21 = vmax.f32 %v703_v16, 0.0 }
 0x1c3   : > { %v776_v19 = vmax.f32 %v698_v18, 0.0  ;;  %v1477_v20 = vpop.f32.mrb[2].mxu1 }
 0x1c4   : > { %v713_v22 = vadd.f32 %v1477_v20, %v1310_v14  ;;  %v707_v23 = vpop.f32.mrb[3].mxu1 }
 0x1c5   : > { %v708_v24 = vadd.f32 %v1310_v14, %v707_v23  ;;  %1498 = vmatprep.mubr.msk.f32.mxu1 %vm800_vm2, %v776_v19 }
 0x1c6   : > { %1499 = vmatmul.mubr.msk.f32.vlgmr.msra.gmra.mrb[16].mxu1 %vm800_vm2, %v777_v21  ;;  %v779_v27 = vmax.f32 %v713_v22, 0.0 }
 0x1c7   : > { %v778_v25 = vmax.f32 %v708_v24, 0.0  ;;  %v1480_v26 = vpop.f32.mrb[4].mxu1 }
 0x1c8   : > { %v723_v28 = vadd.f32 %v1480_v26, %v1310_v14  ;;  %v717_v29 = vpop.f32.mrb[5].mxu1 }
 0x1c9   : > { %v718_v30 = vadd.f32 %v1310_v14, %v717_v29  ;;  %1501 = vmatprep.mubr.msk.f32.mxu1 %vm800_vm2, %v778_v25 }
 0x1ca   : > { %1502 = vmatmul.mubr.msk.f32.gmra.mrb[18].mxu1 %vm800_vm2, %v779_v27  ;;  %v781_v33 = vmax.f32 %v723_v28, 0.0 }
 0x1cb   : > { %v780_v31 = vmax.f32 %v718_v30, 0.0  ;;  %v1483_v32 = vpop.f32.mrb[6].mxu1 }
 0x1cc   : > { %v733_v34 = vadd.f32 %v1483_v32, %v1310_v14  ;;  %v727_v35 = vpop.f32.mrb[7].mxu1 }
 0x1cd   : > { %v728_v36 = vadd.f32 %v1310_v14, %v727_v35  ;;  %1504 = vmatprep.mubr.msk.f32.mxu1 %vm800_vm2, %v780_v31 }
 0x1ce   : > { %1505 = vmatmul.mubr.msk.f32.gmra.mrb[20].mxu1 %vm800_vm2, %v781_v33  ;;  %v783_v39 = vmax.f32 %v733_v34, 0.0 }
 0x1cf   : > { %v782_v37 = vmax.f32 %v728_v36, 0.0  ;;  %v1486_v38 = vpop.f32.mrb[8].mxu1 }
 0x1d0   : > { %v743_v40 = vadd.f32 %v1486_v38, %v1310_v14  ;;  %v737_v41 = vpop.f32.mrb[9].mxu1 }
 0x1d1   : > { %v738_v42 = vadd.f32 %v1310_v14, %v737_v41  ;;  %1507 = vmatprep.mubr.msk.f32.mxu1 %vm800_vm2, %v782_v37 }
 0x1d2   : > { %1508 = vmatmul.mubr.msk.f32.gmra.mrb[22].mxu1 %vm800_vm2, %v783_v39  ;;  %v785_v45 = vmax.f32 %v743_v40, 0.0 }
 0x1d3   : > { %v784_v43 = vmax.f32 %v738_v42, 0.0  ;;  %v1489_v44 = vpop.f32.mrb[10].mxu1 }
 0x1d4   : > { %v753_v46 = vadd.f32 %v1489_v44, %v1310_v14  ;;  %v747_v47 = vpop.f32.mrb[11].mxu1 }
 0x1d5   : > { %v748_v48 = vadd.f32 %v1310_v14, %v747_v47  ;;  %1510 = vmatprep.mubr.msk.f32.mxu1 %vm800_vm2, %v784_v43 }
 0x1d6   : > { %1511 = vmatmul.mubr.msk.f32.gmra.mrb[24].mxu1 %vm800_vm2, %v785_v45  ;;  %v787_v51 = vmax.f32 %v753_v46, 0.0 }
 0x1d7   : > { %v786_v49 = vmax.f32 %v748_v48, 0.0  ;;  %v1492_v50 = vpop.f32.mrb[12].mxu1  ;;  %v1344_v48 = vld [vmem:[%s1819_s8] ss:$0 sm:$0xff] }
 0x1d8   : > { %v763_v52 = vadd.f32 %v1492_v50, %v1310_v14  ;;  %v757_v53 = vpop.f32.mrb[13].mxu1 }
 0x1d9   : > { %v758_v54 = vadd.f32 %v1310_v14, %v757_v53  ;;  %1513 = vmatprep.mubr.msk.f32.mxu1 %vm800_vm2, %v786_v49 }
 0x1da   : > { %1514 = vmatmul.mubr.msk.f32.gmra.mrb[26].mxu1 %vm800_vm2, %v787_v51  ;;  %v789_v57 = vmax.f32 %v763_v52, 0.0 }
 0x1db   : > { %v788_v55 = vmax.f32 %v758_v54, 0.0  ;;  %v1495_v56 = vpop.f32.mrb[14].mxu1 }
 0x1dc   : > { %v773_v58 = vadd.f32 %v1495_v56, %v1310_v14  ;;  %v767_v59 = vpop.f32.mrb[15].mxu1 }
 0x1dd   : > { %v768_v60 = vadd.f32 %v1310_v14, %v767_v59  ;;  %1516 = vmatprep.mubr.msk.f32.mxu1 %vm800_vm2, %v788_v55 }
 0x1de   : > { %1517 = vmatmul.mubr.msk.f32.gmra.mrb[28].mxu1 %vm800_vm2, %v789_v57  ;;  %v791_v62 = vmax.f32 %v773_v58, 0.0 }
 0x1df   : > { %v790_v61 = vmax.f32 %v768_v60, 0.0 }
 0x1e1   : > { %1519 = vmatprep.mubr.msk.f32.mxu1 %vm800_vm2, %v790_v61 }
 0x1e2   : > { %1520 = vmatmul.mubr.msk.f32.gmra.mrb[30].mxu1 %vm800_vm2, %v791_v62 }
 0x299   : > { %v1500_v0 = vpop.f32.mrb[16].mxu1 }
 0x29a   : > { %v921_v1 = vadd.f32 %v1500_v0, %v1327_v63  ;;  %v915_v2 = vpop.f32.mrb[17].mxu1 }
 0x29b   : > { %v916_v3 = vadd.f32 %v1327_v63, %v915_v2 }
 0x29c   : > { %v995_v6 = vmax.f32 %v921_v1, 0.0 }
 0x29d   : > { %v994_v4 = vmax.f32 %v916_v3, 0.0  ;;  %v1503_v5 = vpop.f32.mrb[18].mxu1 }
 0x29e   : > { %v931_v7 = vadd.f32 %v1503_v5, %v1327_v63  ;;  %v925_v8 = vpop.f32.mrb[19].mxu1 }
 0x29f   : > { %v926_v9 = vadd.f32 %v1327_v63, %v925_v8  ;;  %1526 = vmatprep.mubr.msk.f32.mxu0 %vm582_vm1, %v994_v4 }
 0x2a0   : > { %1527 = vmatmul.mubr.msk.f32.vlgmr.msra.gmra.mrb[16].mxu0 %vm582_vm1, %v995_v6  ;;  %v997_v12 = vmax.f32 %v931_v7, 0.0 }
 0x2a1   : > { %v996_v10 = vmax.f32 %v926_v9, 0.0  ;;  %v1506_v11 = vpop.f32.mrb[20].mxu1 }
 0x2a2   : > { %v941_v13 = vadd.f32 %v1506_v11, %v1327_v63  ;;  %v935_v14 = vpop.f32.mrb[21].mxu1 }
 0x2a3   : > { %v936_v15 = vadd.f32 %v1327_v63, %v935_v14  ;;  %1529 = vmatprep.mubr.msk.f32.mxu0 %vm582_vm1, %v996_v10 }
 0x2a4   : > { %1530 = vmatmul.mubr.msk.f32.gmra.mrb[18].mxu0 %vm582_vm1, %v997_v12  ;;  %v999_v18 = vmax.f32 %v941_v13, 0.0 }
 0x2a5   : > { %v998_v16 = vmax.f32 %v936_v15, 0.0  ;;  %v1509_v17 = vpop.f32.mrb[22].mxu1 }
 0x2a6   : > { %v951_v19 = vadd.f32 %v1509_v17, %v1327_v63  ;;  %v945_v20 = vpop.f32.mrb[23].mxu1 }
 0x2a7   : > { %v946_v21 = vadd.f32 %v1327_v63, %v945_v20  ;;  %1532 = vmatprep.mubr.msk.f32.mxu0 %vm582_vm1, %v998_v16 }
 0x2a8   : > { %1533 = vmatmul.mubr.msk.f32.gmra.mrb[20].mxu0 %vm582_vm1, %v999_v18  ;;  %v1001_v24 = vmax.f32 %v951_v19, 0.0 }
 0x2a9   : > { %v1000_v22 = vmax.f32 %v946_v21, 0.0  ;;  %v1512_v23 = vpop.f32.mrb[24].mxu1 }
 0x2aa   : > { %v961_v25 = vadd.f32 %v1512_v23, %v1327_v63  ;;  %v955_v26 = vpop.f32.mrb[25].mxu1 }
 0x2ab   : > { %v956_v27 = vadd.f32 %v1327_v63, %v955_v26  ;;  %1535 = vmatprep.mubr.msk.f32.mxu0 %vm582_vm1, %v1000_v22 }
 0x2ac   : > { %1536 = vmatmul.mubr.msk.f32.gmra.mrb[22].mxu0 %vm582_vm1, %v1001_v24  ;;  %v1003_v30 = vmax.f32 %v961_v25, 0.0 }
 0x2ad   : > { %v1002_v28 = vmax.f32 %v956_v27, 0.0  ;;  %v1515_v29 = vpop.f32.mrb[26].mxu1 }
 0x2ae   : > { %v971_v31 = vadd.f32 %v1515_v29, %v1327_v63  ;;  %v965_v32 = vpop.f32.mrb[27].mxu1 }
 0x2af   : > { %v966_v33 = vadd.f32 %v1327_v63, %v965_v32  ;;  %1538 = vmatprep.mubr.msk.f32.mxu0 %vm582_vm1, %v1002_v28 }
 0x2b0   : > { %1539 = vmatmul.mubr.msk.f32.gmra.mrb[24].mxu0 %vm582_vm1, %v1003_v30  ;;  %v1005_v36 = vmax.f32 %v971_v31, 0.0 }
 0x2b1   : > { %v1004_v34 = vmax.f32 %v966_v33, 0.0  ;;  %v1518_v35 = vpop.f32.mrb[28].mxu1 }
 0x2b2   : > { %v981_v37 = vadd.f32 %v1518_v35, %v1327_v63  ;;  %v975_v38 = vpop.f32.mrb[29].mxu1 }
 0x2b3   : > { %v976_v39 = vadd.f32 %v1327_v63, %v975_v38  ;;  %1541 = vmatprep.mubr.msk.f32.mxu0 %vm582_vm1, %v1004_v34 }
 0x2b4   : > { %1542 = vmatmul.mubr.msk.f32.gmra.mrb[26].mxu0 %vm582_vm1, %v1005_v36  ;;  %v1007_v42 = vmax.f32 %v981_v37, 0.0 }
 0x2b5   : > { %v1006_v40 = vmax.f32 %v976_v39, 0.0  ;;  %v1521_v41 = vpop.f32.mrb[30].mxu1 }
 0x2b6   : > { %v991_v43 = vadd.f32 %v1521_v41, %v1327_v63  ;;  %v985_v44 = vpop.f32.mrb[31].mxu1 }
 0x2b7   : > { %v986_v45 = vadd.f32 %v1327_v63, %v985_v44  ;;  %1544 = vmatprep.mubr.msk.f32.mxu0 %vm582_vm1, %v1006_v40 }
 0x2b8   : > { %1545 = vmatmul.mubr.msk.f32.gmra.mrb[28].mxu0 %vm582_vm1, %v1007_v42  ;;  %v1009_v47 = vmax.f32 %v991_v43, 0.0 }
 0x2b9   : > { %v1008_v46 = vmax.f32 %v986_v45, 0.0 }
 0x2bb   : > { %1547 = vmatprep.mubr.msk.f32.mxu0 %vm582_vm1, %v1008_v46 }
 0x2bc   : > { %1548 = vmatmul.mubr.msk.f32.gmra.mrb[30].mxu0 %vm582_vm1, %v1009_v47 }
 0x373   : > { %v1528_v49 = vpop.f32.mrb[16].mxu0 }
 0x374   : > { %v1139_v50 = vadd.f32 %v1528_v49, %v1344_v48  ;;  %v1133_v51 = vpop.f32.mrb[17].mxu0 }
 0x375   : > { %v1134_v52 = vadd.f32 %v1344_v48, %v1133_v51 }
 0x376   : > { %1213 = vst.msk [vmem:[%s1774_s26 + $0x8] sm:$0xff] %vm363_vm0, %v1139_v50 }
 0x377   : > { %1212 = vst.msk [vmem:[%s1774_s26] sm:$0xff] %vm363_vm0, %v1134_v52  ;;  %v1531_v53 = vpop.f32.mrb[18].mxu0 }
 0x378   : > { %v1149_v54 = vadd.f32 %v1531_v53, %v1344_v48  ;;  %v1143_v55 = vpop.f32.mrb[19].mxu0 }
 0x379   : > { %v1144_v56 = vadd.f32 %v1344_v48, %v1143_v55 }
 0x37a   : > { %1215 = vst.msk [vmem:[%s1774_s26 + $0x18] sm:$0xff] %vm363_vm0, %v1149_v54 }
 0x37b   : > { %1214 = vst.msk [vmem:[%s1774_s26 + $0x10] sm:$0xff] %vm363_vm0, %v1144_v56  ;;  %v1534_v57 = vpop.f32.mrb[20].mxu0 }
 0x37c   : > { %v1159_v58 = vadd.f32 %v1534_v57, %v1344_v48  ;;  %v1153_v59 = vpop.f32.mrb[21].mxu0 }
 0x37d   : > { %v1154_v60 = vadd.f32 %v1344_v48, %v1153_v59 }
 0x37e   : > { %1217 = vst.msk [vmem:[%s1774_s26 + $0x28] sm:$0xff] %vm363_vm0, %v1159_v58 }
 0x37f   : > { %1216 = vst.msk [vmem:[%s1774_s26 + $0x20] sm:$0xff] %vm363_vm0, %v1154_v60  ;;  %v1537_v61 = vpop.f32.mrb[22].mxu0 }
 0x380   : > { %v1169_v62 = vadd.f32 %v1537_v61, %v1344_v48  ;;  %v1163_v63 = vpop.f32.mrb[23].mxu0 }
 0x381   : > { %v1164_v0 = vadd.f32 %v1344_v48, %v1163_v63 }
 0x382   : > { %1219 = vst.msk [vmem:[%s1774_s26 + $0x38] sm:$0xff] %vm363_vm0, %v1169_v62 }
 0x383   : > { %1218 = vst.msk [vmem:[%s1774_s26 + $0x30] sm:$0xff] %vm363_vm0, %v1164_v0  ;;  %v1540_v1 = vpop.f32.mrb[24].mxu0 }
 0x384   : > { %v1179_v2 = vadd.f32 %v1540_v1, %v1344_v48  ;;  %v1173_v3 = vpop.f32.mrb[25].mxu0 }
 0x385   : > { %v1174_v4 = vadd.f32 %v1344_v48, %v1173_v3 }
 0x386   : > { %1221 = vst.msk [vmem:[%s1774_s26 + $0x48] sm:$0xff] %vm363_vm0, %v1179_v2 }
 0x387   : > { %1220 = vst.msk [vmem:[%s1774_s26 + $0x40] sm:$0xff] %vm363_vm0, %v1174_v4  ;;  %v1543_v5 = vpop.f32.mrb[26].mxu0 }
 0x388   : > { %v1189_v6 = vadd.f32 %v1543_v5, %v1344_v48  ;;  %v1183_v7 = vpop.f32.mrb[27].mxu0 }
 0x389   : > { %v1184_v8 = vadd.f32 %v1344_v48, %v1183_v7 }
 0x38a   : > { %1223 = vst.msk [vmem:[%s1774_s26 + $0x58] sm:$0xff] %vm363_vm0, %v1189_v6 }
 0x38b   : > { %1222 = vst.msk [vmem:[%s1774_s26 + $0x50] sm:$0xff] %vm363_vm0, %v1184_v8  ;;  %v1546_v9 = vpop.f32.mrb[28].mxu0 }
 0x38c   : > { %v1199_v10 = vadd.f32 %v1546_v9, %v1344_v48  ;;  %v1193_v11 = vpop.f32.mrb[29].mxu0 }
 0x38d   : > { %v1194_v12 = vadd.f32 %v1344_v48, %v1193_v11 }
 0x38e   : > { %1225 = vst.msk [vmem:[%s1774_s26 + $0x68] sm:$0xff] %vm363_vm0, %v1199_v10 }
 0x38f   : > { %1224 = vst.msk [vmem:[%s1774_s26 + $0x60] sm:$0xff] %vm363_vm0, %v1194_v12  ;;  %v1549_v13 = vpop.f32.mrb[30].mxu0 }
 0x390   : > { %v1209_v14 = vadd.f32 %v1549_v13, %v1344_v48  ;;  %v1203_v15 = vpop.f32.mrb[31].mxu0 }
 0x391   : > { %v1204_v16 = vadd.f32 %v1344_v48, %v1203_v15 }
 0x392   : > { %1227 = vst.msk [vmem:[%s1774_s26 + $0x78] sm:$0xff] %vm363_vm0, %v1209_v14 }
 0x393   : > { %1226 = vst.msk [vmem:[%s1774_s26 + $0x70] sm:$0xff] %vm363_vm0, %v1204_v16 }
 0x394 PF: > { %s19_s30 = sadd.s32 1, %s1580_s30  }
 0x395   : > { %p16_p4 = scmp.ge.s32.totalorder %s19_s30, 4  }
 0x397   :  { %18 = sbr.rel (!%p16_p4) target bundleno = 1 (0x1), region = 86 }

</bundles_post_ra>
